<compile_context>
chip_gen: v7x
topology: tpu7x:2x2x1
jax: 0.10.0
libtpu: 0.0.40
codegen_flags: <defaults>
</compile_context>

<pallas_src>
import functools

import jax
import jax.numpy as jnp
from jax.experimental import pallas as pl
from jax.experimental.pallas import tpu as pltpu


def mdn_kernel(x_ref, w_ref, b_ref, pi_ref, sigma_ref, mu_ref, *,
               go, compute_dtype):
    # Single fused matmul: (TB, D) @ (D, 2*GO + G), f32 accumulation.
    x = x_ref[...].astype(compute_dtype)
    y = jnp.dot(x, w_ref[...], preferred_element_type=jnp.float32)
    y = y + b_ref[...]                                   # one lane-dense bias add

    # sigma branch: exp(linear)   -> columns [0, GO)
    sigma_ref[...] = jnp.exp(y[:, :go])

    # mu branch: linear           -> columns [GO, 2*GO)
    mu_ref[...] = y[:, go:2 * go]

    # pi branch: softmax(linear)  -> columns [2*GO, 2*GO + G)
    logits = y[:, 2 * go:]
    m = jnp.max(logits, axis=1, keepdims=True)
    e = jnp.exp(logits - m)
    pi_ref[...] = e * pl.reciprocal(jnp.sum(e, axis=1, keepdims=True), approx=True)


def mdn_forward(x, packed, num_gaussians, out_features, *, block_b=512):
    """x: (B, D). packed: dict with fused 'w' (D, 2*G*O + G) and 'b' (1, N)."""
    B, D = x.shape
    G = num_gaussians
    GO = G * out_features
    N = 2 * GO + G
    w, b = packed["w"], packed["b"]
    assert w.shape == (D, N) and b.shape == (1, N)

    # Batch tiling: one tile if B is small, otherwise 512-row tiles (pad B up).
    if B <= block_b:
        TB, Bp = B, B
    else:
        TB = block_b                       # multiple of 8 (sublane aligned)
        Bp = pl.cdiv(B, TB) * TB
    if Bp != B:
        x = jnp.pad(x, ((0, Bp - B), (0, 0)))
    nb = Bp // TB

    compute_dtype = w.dtype

    # Rough per-call VMEM footprint: resident weights + double-buffered x/outs.
    xbytes = jnp.dtype(x.dtype).itemsize
    wbytes = jnp.dtype(w.dtype).itemsize
    vmem_est = (D * N * wbytes + N * 4
                + 2 * TB * D * xbytes
                + 2 * TB * N * 4)
    # Keep the limit safe on v7x (64 MiB physical VMEM); re-derive TB per chip
    # generation if D is very large.
    vmem_limit = int(min(max(2 * vmem_est, 32 * 1024 * 1024), 64 * 1024 * 1024))

    kernel = functools.partial(mdn_kernel, go=GO, compute_dtype=compute_dtype)

    pi, sigma_flat, mu_flat = pl.pallas_call(
        kernel,
        out_shape=(
            jax.ShapeDtypeStruct((Bp, G), jnp.float32),
            jax.ShapeDtypeStruct((Bp, GO), jnp.float32),
            jax.ShapeDtypeStruct((Bp, GO), jnp.float32),
        ),
        grid_spec=pltpu.PrefetchScalarGridSpec(
            num_scalar_prefetch=0,
            grid=(nb,),
            in_specs=[
                pl.BlockSpec((TB, D), lambda i: (i, 0)),   # x: pipelined per tile
                pl.BlockSpec((D, N), lambda i: (0, 0)),    # fused W: VMEM-resident
                pl.BlockSpec((1, N), lambda i: (0, 0)),    # fused b: VMEM-resident
            ],
            out_specs=[
                pl.BlockSpec((TB, G), lambda i: (i, 0)),
                pl.BlockSpec((TB, GO), lambda i: (i, 0)),
                pl.BlockSpec((TB, GO), lambda i: (i, 0)),
            ],
        ),
        compiler_params=pltpu.CompilerParams(
            dimension_semantics=("parallel",),             # megacore on v7x
            vmem_limit_bytes=vmem_limit,
        ),
    )(x, w, b)

    if Bp != B:
        pi, sigma_flat, mu_flat = pi[:B], sigma_flat[:B], mu_flat[:B]
    sigma = sigma_flat.reshape(B, G, out_features)
    mu = mu_flat.reshape(B, G, out_features)
    return pi, sigma, mu


def init_mdn_params(key, in_features, out_features, num_gaussians):
    """Deterministic init mimicking nn.Linear's U(-1/sqrt(D), 1/sqrt(D))."""
    G, O, D = num_gaussians, out_features, in_features
    bound = 1.0 / (D ** 0.5)
    ks = jax.random.split(key, 6)
    u = lambda k, shape: jax.random.uniform(k, shape, jnp.float32, -bound, bound)
    return {
        "w_pi": u(ks[0], (D, G)),
        "b_pi": u(ks[1], (1, G)),
        "w_sigma": u(ks[2], (D, G * O)),
        "b_sigma": u(ks[3], (1, G * O)),
        "w_mu": u(ks[4], (D, G * O)),
        "b_mu": u(ks[5], (1, G * O)),
    }


def pack_mdn_params(params, compute_dtype=jnp.bfloat16):
    """Pack the three linears into one fused (D, 2*G*O + G) matrix, done ONCE
    at init so no per-call concat/cast traffic. Order [sigma | mu | pi] keeps
    the wide slices 128-lane aligned."""
    w = jnp.concatenate([params["w_sigma"], params["w_mu"], params["w_pi"]], axis=1)
    b = jnp.concatenate([params["b_sigma"], params["b_mu"], params["b_pi"]], axis=1)
    return {"w": w.astype(compute_dtype), "b": b.astype(jnp.float32)}


def mdn_reference(x, params, num_gaussians, out_features, compute_dtype=jnp.float32):
    """Pure-JAX reference mirroring the PyTorch forward, with the same operand
    rounding as the kernel's bf16 MXU path (f32 accumulation)."""
    f32 = jnp.float32
    xc = x.astype(compute_dtype).astype(f32)
    wp = params["w_pi"].astype(compute_dtype).astype(f32)
    ws = params["w_sigma"].astype(compute_dtype).astype(f32)
    wm = params["w_mu"].astype(compute_dtype).astype(f32)
    logits = xc @ wp + params["b_pi"]
    pi = jax.nn.softmax(logits, axis=1)
    sigma = jnp.exp(xc @ ws + params["b_sigma"])
    sigma = sigma.reshape(-1, num_gaussians, out_features)
    mu = (xc @ wm + params["b_mu"]).reshape(-1, num_gaussians, out_features)
    return pi, sigma, mu


if __name__ == "__main__":
    B, D, G, O = 8, 32, 8, 16          # batch, in_features, num_gaussians, out_features

    key = jax.random.PRNGKey(0)
    k_x, k_p = jax.random.split(key)
    x = jax.random.normal(k_x, (B, D), dtype=jnp.float32)
    params = init_mdn_params(k_p, D, O, G)
    packed = pack_mdn_params(params, compute_dtype=jnp.bfloat16)

    fwd = jax.jit(functools.partial(mdn_forward, num_gaussians=G, out_features=O))
    pi, sigma, mu = fwd(x, packed)
    jax.block_until_ready((pi, sigma, mu))

    # sanity check against pure-JAX reference (same bf16 operand rounding)
    pi_r, sigma_r, mu_r = mdn_reference(x, params, G, O, compute_dtype=jnp.bfloat16)
    assert pi.shape == (B, G) and sigma.shape == (B, G, O) and mu.shape == (B, G, O)
    assert jnp.allclose(pi, pi_r, atol=2e-3, rtol=2e-3)
    assert jnp.allclose(sigma, sigma_r, atol=2e-3, rtol=2e-2)
    assert jnp.allclose(mu, mu_r, atol=2e-3, rtol=2e-2)
    # pi rows sum to 1 (approx reciprocal -> loosened tolerance)
    assert jnp.allclose(jnp.sum(pi, axis=1), 1.0, atol=2e-3)

    print("KERNEL_OK")
</pallas_src>

<mosaic_0001>
module attributes {stable_mosaic.version = 11 : i64} {
  func.func @mdn_kernel(%arg0: i32, %arg1: memref<8x32xf32, #tpu.memory_space<vmem>>, %arg2: memref<32x264xbf16, #tpu.memory_space<vmem>>, %arg3: memref<1x264xf32, #tpu.memory_space<vmem>>, %arg4: memref<8x8xf32, #tpu.memory_space<vmem>>, %arg5: memref<8x128xf32, #tpu.memory_space<vmem>>, %arg6: memref<8x128xf32, #tpu.memory_space<vmem>>) attributes {dimension_semantics = [#tpu.dimension_semantics<parallel>], iteration_bounds = array<i64: 1>, scalar_prefetch = 0 : i64, scratch_operands = 0 : i64, tpu.core_type = #tpu.core_type<tc>, window_params = [{transform_indices = @transform_0, window_bounds = array<i64: 8, 32>}, {pipeline_mode = #tpu.pipeline_mode<synchronous>, transform_indices = @transform_1, window_bounds = array<i64: 32, 264>}, {pipeline_mode = #tpu.pipeline_mode<synchronous>, transform_indices = @transform_2, window_bounds = array<i64: 1, 264>}, {transform_indices = @transform_3, window_bounds = array<i64: 8, 8>}, {transform_indices = @transform_4, window_bounds = array<i64: 8, 128>}, {transform_indices = @transform_5, window_bounds = array<i64: 8, 128>}]} {
    %c0 = arith.constant 0 : index
    %c0_0 = arith.constant 0 : index
    %0 = vector.load %arg1[%c0, %c0_0] : memref<8x32xf32, #tpu.memory_space<vmem>>, vector<8x32xf32>
    %1 = arith.truncf %0 : vector<8x32xf32> to vector<8x32xbf16>
    %c0_1 = arith.constant 0 : index
    %c0_2 = arith.constant 0 : index
    %2 = vector.load %arg2[%c0_1, %c0_2] : memref<32x264xbf16, #tpu.memory_space<vmem>>, vector<32x264xbf16>
    %cst = arith.constant dense<0.000000e+00> : vector<8x264xf32>
    %3 = tpu.matmul %1, %2, %cst {dimension_numbers = #tpu.dot_dimension_numbers<[1], [0], [0], [1], [0, 0, 1, 1], [], []>} : vector<8x32xbf16>, vector<32x264xbf16>, vector<8x264xf32> -> vector<8x264xf32>
    %c0_3 = arith.constant 0 : index
    %c0_4 = arith.constant 0 : index
    %4 = vector.load %arg3[%c0_3, %c0_4] : memref<1x264xf32, #tpu.memory_space<vmem>>, vector<1x264xf32>
    %5 = vector.broadcast %4 : vector<1x264xf32> to vector<8x264xf32>
    %6 = arith.addf %3, %5 : vector<8x264xf32>
    %7 = vector.extract_strided_slice %6 {offsets = [0, 0], sizes = [8, 128], strides = [1, 1]} : vector<8x264xf32> to vector<8x128xf32>
    %8 = math.exp %7 : vector<8x128xf32>
    %c0_5 = arith.constant 0 : index
    %c0_6 = arith.constant 0 : index
    %9 = vector.load %arg5[%c0_5, %c0_6] : memref<8x128xf32, #tpu.memory_space<vmem>>, vector<8x128xf32>
    tpu.vector_store %arg5[%c0_5, %c0_6], %8 {strides = array<i32>} : memref<8x128xf32, #tpu.memory_space<vmem>>, vector<8x128xf32>,
    %10 = vector.extract_strided_slice %6 {offsets = [0, 128], sizes = [8, 128], strides = [1, 1]} : vector<8x264xf32> to vector<8x128xf32>
    %c0_7 = arith.constant 0 : index
    %c0_8 = arith.constant 0 : index
    %11 = vector.load %arg6[%c0_7, %c0_8] : memref<8x128xf32, #tpu.memory_space<vmem>>, vector<8x128xf32>
    tpu.vector_store %arg6[%c0_7, %c0_8], %10 {strides = array<i32>} : memref<8x128xf32, #tpu.memory_space<vmem>>, vector<8x128xf32>,
    %12 = vector.extract_strided_slice %6 {offsets = [0, 256], sizes = [8, 8], strides = [1, 1]} : vector<8x264xf32> to vector<8x8xf32>
    %cst_9 = arith.constant dense<0xFF800000> : vector<8xf32>
    %13 = vector.multi_reduction <maximumf>, %12, %cst_9 [1] : vector<8x8xf32> to vector<8xf32>
    %14 = vector.shape_cast %13 : vector<8xf32> to vector<8x1xf32>
    %15 = vector.broadcast %14 : vector<8x1xf32> to vector<8x8xf32>
    %16 = arith.subf %12, %15 : vector<8x8xf32>
    %17 = math.exp %16 : vector<8x8xf32>
    %cst_10 = arith.constant dense<0.000000e+00> : vector<8xf32>
    %18 = vector.multi_reduction <add>, %17, %cst_10 [1] : vector<8x8xf32> to vector<8xf32>
    %19 = vector.shape_cast %18 : vector<8xf32> to vector<8x1xf32>
    %20 = tpu.reciprocal %19 {approx = true} : vector<8x1xf32> -> vector<8x1xf32>
    %21 = vector.broadcast %20 : vector<8x1xf32> to vector<8x8xf32>
    %22 = arith.mulf %17, %21 : vector<8x8xf32>
    %c0_11 = arith.constant 0 : index
    %c0_12 = arith.constant 0 : index
    %23 = vector.load %arg4[%c0_11, %c0_12] : memref<8x8xf32, #tpu.memory_space<vmem>>, vector<8x8xf32>
    tpu.vector_store %arg4[%c0_11, %c0_12], %22 {strides = array<i32>} : memref<8x8xf32, #tpu.memory_space<vmem>>, vector<8x8xf32>,
    return
  }
  func.func @transform_0(%arg0: i32) -> (i32, i32) {
    %c0_i32 = arith.constant 0 : i32
    %c0_i32_0 = arith.constant 0 : i32
    return %arg0, %c0_i32 : i32, i32
  }
  func.func @transform_1(%arg0: i32) -> (i32, i32) {
    %c0_i32 = arith.constant 0 : i32
    %c0_i32_0 = arith.constant 0 : i32
    %c0_i32_1 = arith.constant 0 : i32
    return %c0_i32, %c0_i32_0 : i32, i32
  }
  func.func @transform_2(%arg0: i32) -> (i32, i32) {
    %c0_i32 = arith.constant 0 : i32
    %c0_i32_0 = arith.constant 0 : i32
    %c0_i32_1 = arith.constant 0 : i32
    return %c0_i32, %c0_i32_0 : i32, i32
  }
  func.func @transform_3(%arg0: i32) -> (i32, i32) {
    %c0_i32 = arith.constant 0 : i32
    %c0_i32_0 = arith.constant 0 : i32
    return %arg0, %c0_i32 : i32, i32
  }
  func.func @transform_4(%arg0: i32) -> (i32, i32) {
    %c0_i32 = arith.constant 0 : i32
    %c0_i32_0 = arith.constant 0 : i32
    return %arg0, %c0_i32 : i32, i32
  }
  func.func @transform_5(%arg0: i32) -> (i32, i32) {
    %c0_i32 = arith.constant 0 : i32
    %c0_i32_0 = arith.constant 0 : i32
    return %arg0, %c0_i32 : i32, i32
  }
}

</mosaic_0001>

<bundles_post_ra>
// kernel: mdn_forward.1
= control target key start
LH: loop header
LB: loop body
LE: loop exit
PB: predicated region body
PF: predicated region fallthrough
CT: control target
= control target key end

     0   :  { %11 = vsyncpa [#allocation3], 0  ;;  %s436_s0 = inlined_call_operand.hbm [shape: f32[8,32], index: 0, kind: input, shape index: {}]   ;;  %s437_s1 = inlined_call_operand.hbm [shape: bf16[32,264], index: 1, kind: input, shape index: {}]   ;;  %s438_s2 = inlined_call_operand.vmem [shape: f32[1,264], index: 2, kind: input, shape index: {}]   ;;  %s439_s3 = inlined_call_operand.hbm [shape: f32[8,8], index: 3, kind: output, shape index: {0}]   ;;  %s440_s4 = inlined_call_operand.vmem [shape: f32[8,128], index: 4, kind: output, shape index: {1}]   ;;  %s441_s5 = inlined_call_operand.vmem [shape: f32[8,128], index: 5, kind: output, shape index: {2}]  }
   0x1   :  { %12 = vsyncpa [#allocation6], 0 }
   0x2   :  { %13 = vsyncpa [#allocation4], 0  ;;  %s343_s18 = smov [#allocation2]   ;;  %s344_s20 = smov [#allocation5]  }
   0x3   :  { %s20_s19 = sshll.u32 %s343_s18, 4  ;;  %s29_s21 = sshll.u32 %s344_s20, 4  ;;  %s21_s19 = int_to_ptr.vmem [resolvable:$true] %s20_s19  ;;  %s381_s21 = int_to_ptr.vmem [resolvable:$true] %s29_s21 }
   0x4   :  { %s271_s24 = scalar_lea.hbm %s436_s0, 128 }
   0x5   :  { %p272_p0 = scmp.ne.s32.totalorder %s436_s0, %s271_s24  ;;  %p275_p1 = scmp.lt.u32.totalorder %s271_s24, %s436_s0 }
   0x7   :  { %p277_p2 = pnand %p275_p1, %p272_p0 }
   0x9   :  { %280 = shalt.err (!%p277_p2)
}
   0xa   :  { %s281_s29 = scalar_lea.vmem %s21_s19, 128  ;;  %p286_p4 = scmp.lt.s32.totalorder %s21_s19, %s21_s19 }
   0xb   :  { %p282_p3 = scmp.ne.s32.totalorder %s21_s19, %s281_s29  ;;  %p287_p5 = scmp.lt.s32.totalorder %s281_s29, %s281_s29 }
   0xd   :  { %p288_p6 = por %p287_p5, %p286_p4 }
   0xf   :  { %p289_p7 = pnand %p288_p6, %p282_p3 }
  0x11   :  { %292 = shalt.err (!%p289_p7)
}
  0x12   :  { %23 = dma.hbm_to_vmem [thread:$0]  %s436_s0, 128, %s21_s19, [#allocation3]  }
  0x13   :  { %s293_s9 = scalar_lea.hbm %s437_s1, 768 }
  0x14   :  { %p294_p8 = scmp.ne.s32.totalorder %s437_s1, %s293_s9  ;;  %p297_p9 = scmp.lt.u32.totalorder %s293_s9, %s437_s1 }
  0x16   :  { %p299_p10 = pnand %p297_p9, %p294_p8 }
  0x18   :  { %302 = shalt.err (!%p299_p10)
}
  0x19   :  { %s303_s14 = scalar_lea.vmem %s381_s21, 768  ;;  %p308_p12 = scmp.lt.s32.totalorder %s381_s21, %s381_s21 }
  0x1a   :  { %p304_p11 = scmp.ne.s32.totalorder %s381_s21, %s303_s14  ;;  %p309_p13 = scmp.lt.s32.totalorder %s303_s14, %s303_s14 }
  0x1c   :  { %p310_p0 = por %p309_p13, %p308_p12 }
  0x1e   :  { %p311_p1 = pnand %p310_p0, %p304_p11 }
  0x20   :  { %314 = shalt.err (!%p311_p1)
}
  0x21   :  { %s345_s0 = smov 192   ;;  %s346_s15 = smov 12  }
  0x22   :  { %35 = dma.hbm_to_vmem [thread:$0]  %s437_s1, 768, %s381_s21, [#allocation6], %s345_s0, %s345_s0, %s346_s15  }
  0x23   :  { %337 = dma.done.wait [#allocation3], 128  }
  0x24   :  { %338 = vsyncadd [#allocation3], 4294967168 }
  0x25   :  { %339 = dma.done.wait [#allocation6], 768  }
  0x26   :  { %340 = vsyncadd [#allocation6], 4294966528  ;;  %v347_v0 = vmov 0.0   ;;  %vm348_vm0 = vmmov 0   ;;  %v257_v1 = vld [vmem:[#allocation5 + $0x8] ss:$12 sps:$4 sm:$0xff]   ;;  %v57_v10 = vlaneseq }
  0x27   :  { %241 = vmatprep.subr.bf16.mxu1 %v347_v0  ;;  %245 = vmatprep.mubr.msk.bf16.mxu1 %vm348_vm0, %v347_v0  ;;  %v258_v2 = vld [vmem:[#allocation5 + $0x20] ss:$12 sps:$4 sm:$0xff]   ;;  %v45_v3 = vld [vmem:[#allocation2] sm:$0xff]  ;;  %vm104_vm1 = vcmask 261120   ;;  %v259_v5 = vld [vmem:[#allocation5 + $0x4] ss:$12 sps:$4 sm:$0xff]  }
  0x28   :  { %242 = vmatpush3.bf16.msra.mxu1 %v257_v1  ;;  %v46_v4 = vpack.c.bf16 %v45_v3, %v45_v3  ;;  %v261_v6 = vld [vmem:[#allocation5] ss:$12 sps:$4 sm:$0xff]   ;;  %v262_v7 = vld [vmem:[#allocation5 + $0x1c] ss:$12 sps:$4 sm:$0xff]   ;;  %108 = vmatprep.subr.bf16.mxu0 %v259_v5  ;;  %v349_v8 = vmov 0   ;;  %v58_v11 = vshrl.u32 %v57_v10, 7 }
  0x29   :  { %243 = vmatprep.subr.bf16.mxu1 %v347_v0  ;;  %140 = vmatprep.mubr.bf16.mxu0 %v349_v8  ;;  %v264_v9 = vld [vmem:[#allocation5 + $0x18] ss:$12 sps:$4 sm:$0xff]   ;;  %v55_v13 = vld [vmem:[%s438_s2] sm:$0x7]  ;;  %vm193_vm2 = vcmask 64512   ;;  %s350_s22 = smov [#allocation7]  }
  0x2a   :  { %109 = vmatpush1.bf16.msra.mxu0 %v261_v6  ;;  %v67_v12 = vsub.s32 2, %v58_v11  ;;  %v59_v21 = vsub.s32 0, %v58_v11  ;;  %v63_v22 = vsub.s32 1, %v58_v11  ;;  %s212_s23 = sshll.u32 %s350_s22, 4  ;;  %s213_s23 = int_to_ptr.vmem [resolvable:$true] %s212_s23 }
  0x2b   :  { %110 = vmatprep.subr.bf16.mxu0 %v262_v7  ;;  %p320_p3 = scmp.lt.s32.totalorder %s213_s23, %s213_s23 }
  0x2c   :  { %244 = vmatpush3.bf16.msra.mxu1 %v258_v2  ;;  %v68_v14 = vrot.slane %v55_v13, %v67_v12  ;;  %v60_v23 = vrot.slane %v55_v13, %v59_v21  ;;  %v64_v24 = vrot.slane %v55_v13, %v63_v22 }
  0x2e   :  { %111 = vmatpush1.bf16.msra.mxu0 %v264_v9 }
  0x2f   :  { %246 = vmatmul.mubr.msk.bf16.vlgmr.msra.gmra.mrb[0].mxu1 %vm104_vm1, %v46_v4 }
  0x31   :  { %236 = vmatmul.mubr.msk.bf16.vlgmr.msra.gmra.mrb[0].mxu0 %vm104_vm1, %v46_v4 }
 0x102   :  { %v183_v15 = vpop.f32.mrb[0].mxu1 }
 0x103   :  { %v184_v16 = vadd.f32 %v183_v15, %v68_v14  ;;  %v247_v17 = vpop.f32.mrb[1].mxu1 }
 0x104   :  { %v186_v18 = vpop.f32.mrb[2].mxu1  ;;  %v142_v25 = vpop.f32.mrb[0].mxu0 }
 0x105   :  { %v248_v19 = vpop.f32.mrb[3].mxu1  ;;  %v194_v20 = vsel %vm193_vm2, %v184_v16, -inf  ;;  %v143_v26 = vadd.f32 %v142_v25, %v60_v23  ;;  %v144_v27 = vpop.f32.mrb[1].mxu0 }
 0x106   :  { %195 = vmax.xlane.f32.xlu0 %v194_v20  ;;  %v145_v28 = vadd.f32 %v144_v27, %v64_v24  ;;  %v146_v29 = vpop.f32.mrb[2].mxu0 }
 0x107   :  { %v189_v30 = vmul.f32 1.442695, %v143_v26  ;;  %v147_v31 = vpop.f32.mrb[3].mxu0 }
 0x108   :  { %192 = vst [vmem:[%s441_s5] sm:$0xff] %v145_v28  ;;  %s315_s5 = scalar_lea.vmem %s213_s23, 128 }
 0x109   :  { %265 = vpow2.f32 %v189_v30  ;;  %p316_p2 = scmp.ne.s32.totalorder %s213_s23, %s315_s5  ;;  %p321_p4 = scmp.lt.s32.totalorder %s315_s5, %s315_s5 }
 0x10b   :  { %p322_p5 = por %p321_p4, %p320_p3 }
 0x10d   :  { %p323_p6 = pnand %p322_p5, %p316_p2 }
 0x113   :  { %v266_v32 = vpop.eup %265 }
 0x114   :  { %191 = vst [vmem:[%s440_s4] sm:$0xff] %v266_v32 }
 0x193   :  { %v196_v33 = vpop.xlane.xlu0 %195 }
 0x194   :  { %v197_v34 = vsub.f32 %v184_v16, %v196_v33 }
 0x196   :  { %v198_v35 = vmul.f32 1.442695, %v197_v34 }
 0x198   :  { %267 = vpow2.f32 %v198_v35 }
 0x1a2   :  { %v268_v36 = vpop.eup %267 }
 0x1a3   :  { %v200_v37 = vsel %vm193_vm2, %v268_v36, 0.0 }
 0x1a4   :  { %201 = vadd.xlane.f32.xlu0 %v200_v37 }
 0x231   :  { %v202_v38 = vpop.xlane.xlu0 %201 }
 0x232   :  { %269 = vrcp.f32 %v202_v38 }
 0x23c   :  { %v270_v39 = vpop.eup %269 }
 0x23d   :  { %v204_v40 = vmul.f32 %v270_v39, %v268_v36 }
 0x23f   :  { %205 = vst.msk [vmem:[#allocation7] sm:$0xff] %vm193_vm2, %v204_v40 }
 0x240   :  { %326 = shalt.err (!%p323_p6)
}
 0x241   :  { %s327_s25 = scalar_lea.hbm %s439_s3, 128 }
 0x242   :  { %p328_p7 = scmp.ne.s32.totalorder %s439_s3, %s327_s25  ;;  %p331_p8 = scmp.lt.u32.totalorder %s327_s25, %s439_s3 }
 0x244   :  { %p333_p9 = pnand %p331_p8, %p328_p7 }
 0x246   :  { %336 = shalt.err (!%p333_p9)
}
 0x247   :  { %215 = dma.vmem_to_hbm [thread:$0]  %s213_s23, 128, %s439_s3, [#allocation4]  }
 0x248   :  { %341 = dma.done.wait [#allocation4], 128  }
 0x249   :  { %342 = vsyncadd [#allocation4], 4294967168 }
 0x24a   :  { %227 = vsyncpa [#allocation3], 1 }
 0x24b   :  { %228 = vsyncpa [#allocation6], 1 }
 0x24c   :  { %229 = vsyncpa [#allocation4], 1 }

</bundles_post_ra>
